<compile_context>
chip_gen: v7x
topology: tpu7x:2x2x1
jax: 0.10.0
libtpu: 0.0.40
codegen_flags: <defaults>
</compile_context>

<pallas_src>
import functools

import numpy as np
import jax
import jax.numpy as jnp
from jax import lax
from jax.experimental import pallas as pl
from jax.experimental.pallas import tpu as pltpu

LANES = 128
SUBLANES = 8


def _tpu_config():
    """Conservative generation probe: (vmem_bytes, num_tensorcores)."""
    vmem_bytes = 0
    num_cores = 1
    try:
        info = pltpu.get_tpu_info()
        vmem_bytes = int(getattr(info, "vmem_capacity_bytes", 0) or 0)
        for attr in ("num_cores", "core_count", "tensorcore_count",
                     "num_tensorcores"):
            val = getattr(info, attr, None)
            if val:
                num_cores = max(1, int(val))
                break
    except Exception:
        pass
    return vmem_bytes, min(num_cores, 2)


_VMEM_BYTES, _NUM_TC = _tpu_config()
if _VMEM_BYTES >= 100 * 1024 * 1024:
    # 128-MiB-VMEM parts (v5e / v6e): bigger tiles, fewer per-step overheads.
    MAX_BLOCK_ROWS = 8192            # 4 MiB per f32 input block
    _VMEM_LIMIT = 80 * 1024 * 1024
else:
    # 64-MiB parts (v7x) or probe failure: stay conservative.
    MAX_BLOCK_ROWS = 4096            # 2 MiB per f32 input block
    _VMEM_LIMIT = 48 * 1024 * 1024


# ----------------------------------------------------------------------------
# Fused kernel: focal-loss accumulation over the heatmap tiles + (epilogue)
# masked L1 regression sum over the small gathered-center slab.
# ----------------------------------------------------------------------------
def _fused_loss_kernel(block_rows, total_rows,
                       p_ref, g_ref, rp_ref, rt_ref, rw_ref,
                       loss_ref, npos_ref, reg_ref,
                       acc_loss, acc_npos):
    c = pl.program_id(0)
    i = pl.program_id(1)
    nb = pl.num_programs(1)
    groups = block_rows // SUBLANES

    @pl.when(i == 0)
    def _():
        acc_loss[...] = jnp.zeros_like(acc_loss)
        acc_npos[...] = jnp.zeros_like(acc_npos)

    # Global row index of the first row of this block.
    row0 = (c * nb + i) * block_rows

    def accum(pred_raw, gt):
        pred = jnp.maximum(pred_raw, 1e-12)              # torch.clamp(pred, 1e-12)
        is_pos = gt == 1.0
        pos_inds = is_pos.astype(jnp.float32)
        neg_inds = (gt < 1.0).astype(jnp.float32)
        one_m_gt = 1.0 - gt
        sq = one_m_gt * one_m_gt
        neg_w = sq * sq                                   # (1 - gt) ** 4, two muls
        one_m_pred = 1.0 - pred
        # Single EUP log shared by pos and neg branches.
        logx = jnp.log(jnp.where(is_pos, pred, one_m_pred))
        loss = logx * (one_m_pred * one_m_pred * pos_inds
                       + pred * pred * neg_w * neg_inds)
        # Reduce the tile to one vreg before accumulating (no full-block
        # accumulator read-modify-write stream).
        acc_loss[...] += loss.reshape(groups, SUBLANES, LANES).sum(axis=0)
        acc_npos[...] += pos_inds.reshape(groups, SUBLANES, LANES).sum(axis=0)

    full = row0 + block_rows <= total_rows
    partial = jnp.logical_and(row0 < total_rows, jnp.logical_not(full))

    # Fast path (the common case): block fully in bounds -> no mask math.
    @pl.when(full)
    def _():
        accum(p_ref[...].astype(jnp.float32), g_ref[...].astype(jnp.float32))

    # Masked path: the single tail block straddling total_rows.
    @pl.when(partial)
    def _():
        ridx = row0 + lax.broadcasted_iota(jnp.int32, (block_rows, LANES), 0)
        inb = ridx < total_rows
        gt = jnp.where(inb, g_ref[...].astype(jnp.float32), 2.0)   # pos=0, neg=0
        pr = jnp.where(inb, p_ref[...].astype(jnp.float32), 0.5)   # log stays finite
        accum(pr, gt)
    # row0 >= total_rows (clamped overshoot step of the last core): skip compute.

    @pl.when(i == nb - 1)
    def _():
        # Write the partial-sum vregs directly; final reduction happens in JAX.
        loss_ref[...] = acc_loss[...]
        npos_ref[...] = acc_npos[...]

    @pl.when(jnp.logical_and(i == nb - 1, c == 0))
    def _():
        reg = jnp.abs(rp_ref[...] - rt_ref[...]) * rw_ref[...]
        reg_ref[...] = reg.reshape(-1, SUBLANES, LANES).sum(axis=0)


def _fused_loss_call(p2d, g2d, reg_pred, reg_tgt, reg_w):
    rows = p2d.shape[0]
    block_rows = min(MAX_BLOCK_ROWS, rows)
    nblocks = (rows + block_rows - 1) // block_rows
    reg_rows = reg_pred.shape[0]

    def run(ncores, core_sem):
        nb = (nblocks + ncores - 1) // ncores

        def hm_map(c, i):
            # Clamp so the masked-out overshoot step of the last core still
            # maps to an in-range block (its compute is skipped in-kernel).
            return (jnp.minimum(c * nb + i, nblocks - 1), 0)

        def reg_map(c, i):
            return (0, 0)

        def out_map(c, i):
            return (c, 0)

        n = p2d.size
        cost = pl.CostEstimate(
            flops=16 * n + 3 * reg_pred.size,
            transcendentals=n,
            bytes_accessed=(p2d.size * p2d.dtype.itemsize
                            + g2d.size * g2d.dtype.itemsize
                            + 3 * 4 * reg_pred.size
                            + 3 * 4 * ncores * SUBLANES * LANES),
        )

        kernel = functools.partial(_fused_loss_kernel, block_rows, rows)
        out_sds = jax.ShapeDtypeStruct((ncores * SUBLANES, LANES), jnp.float32)
        return pl.pallas_call(
            kernel,
            out_shape=(out_sds, out_sds, out_sds),
            grid=(ncores, nb),
            in_specs=[
                pl.BlockSpec((block_rows, LANES), hm_map),
                pl.BlockSpec((block_rows, LANES), hm_map),
                pl.BlockSpec((reg_rows, LANES), reg_map),
                pl.BlockSpec((reg_rows, LANES), reg_map),
                pl.BlockSpec((reg_rows, LANES), reg_map),
            ],
            out_specs=(
                pl.BlockSpec((SUBLANES, LANES), out_map),
                pl.BlockSpec((SUBLANES, LANES), out_map),
                pl.BlockSpec((SUBLANES, LANES), out_map),
            ),
            scratch_shapes=[
                pltpu.VMEM((SUBLANES, LANES), jnp.float32),
                pltpu.VMEM((SUBLANES, LANES), jnp.float32),
            ],
            compiler_params=pltpu.CompilerParams(
                dimension_semantics=(core_sem, pltpu.ARBITRARY),
                vmem_limit_bytes=_VMEM_LIMIT),
            cost_estimate=cost,
        )(p2d, g2d, reg_pred, reg_tgt, reg_w)

    ncores = min(_NUM_TC, nblocks)
    if ncores > 1:
        try:
            loss_o, npos_o, reg_o = run(ncores, pltpu.CORE_PARALLEL)
        except Exception:
            # Safe fallback for parts / toolchains that reject the 2-TC split.
            loss_o, npos_o, reg_o = run(1, pltpu.ARBITRARY)
    else:
        loss_o, npos_o, reg_o = run(1, pltpu.ARBITRARY)

    loss_sum = jnp.sum(loss_o)                 # all per-core partial vregs
    npos = jnp.sum(npos_o)
    reg_sum = jnp.sum(reg_o[:SUBLANES])        # only core 0's block is written
    return loss_sum, npos, reg_sum


# ----------------------------------------------------------------------------
# Loss wrapper (mirrors the PyTorch module's forward).
# ----------------------------------------------------------------------------
class Loss:
    def __init__(self, down_stride=4, alpha=1.0, beta=0.1, gamma=1.0):
        self.down_stride = down_stride
        self.alpha = alpha
        self.beta = beta
        self.gamma = gamma

    def __call__(self, pre, gt):
        pre_heatmap, pre_wh, pre_offset = pre
        imgs, gt_boxes, gt_classes, gt_hm, infos = gt
        B, _, H, W = pre_wh.shape

        # ---- focal-loss inputs: native-dtype lane-dense (rows, 128) reshape.
        total = pre_heatmap.size
        rows_l = (total + LANES - 1) // LANES
        rows = ((rows_l + SUBLANES - 1) // SUBLANES) * SUBLANES
        p_flat = pre_heatmap.reshape(-1)
        g_flat = gt_hm.reshape(-1)
        padn = rows * LANES - total
        if padn:
            # rare fallback: heatmap size not an (8*128)-multiple -> tiny pad
            p_flat = jnp.pad(p_flat, (0, padn), constant_values=0.5)
            g_flat = jnp.pad(g_flat, (0, padn), constant_values=2.0)
        p2d = p_flat.reshape(rows, LANES)
        g2d = g_flat.reshape(rows, LANES)

        # ---- regression inputs: one batched gather at the (padded) centers
        counts = [int(infos[b]['center'].shape[0]) for b in range(B)]
        num = sum(counts)
        nmax = max(counts + [1])
        ct_pad = jnp.stack([
            jnp.pad(jnp.asarray(infos[b]['center'], jnp.float32),
                    ((0, nmax - counts[b]), (0, 0)))
            for b in range(B)])                                     # (B, nmax, 2)
        valid = jnp.asarray(
            np.array([[1.0] * counts[b] + [0.0] * (nmax - counts[b])
                      for b in range(B)], np.float32))              # (B, nmax)

        ct_int = ct_pad.astype(jnp.int32)                           # trunc == .long()
        lin = ct_int[..., 1] * W + ct_int[..., 0]                   # (B, nmax)
        pred_wh = jnp.take_along_axis(
            pre_wh.reshape(B, 2, H * W), lin[:, None, :], axis=2)       # (B, 2, nmax)
        pred_off = jnp.take_along_axis(
            pre_offset.reshape(B, 2, H * W), lin[:, None, :], axis=2)   # (B, 2, nmax)

        # valid boxes are the first counts[b] rows (gt_classes > 0 convention)
        boxes = gt_boxes[:, :nmax]
        wh_tgt = jnp.stack([boxes[..., 2] - boxes[..., 0],
                            boxes[..., 3] - boxes[..., 1]], axis=1) / self.down_stride
        off_tgt = jnp.transpose(ct_pad - ct_int.astype(jnp.float32), (0, 2, 1))

        w = jnp.broadcast_to(valid[:, None, :], (B, 2, nmax))
        reg_pred = jnp.concatenate([pred_wh.reshape(-1), pred_off.reshape(-1)])
        reg_tgt = jnp.concatenate([wh_tgt.reshape(-1), off_tgt.reshape(-1)])
        reg_w = jnp.concatenate([(w * self.beta).reshape(-1),
                                 (w * self.gamma).reshape(-1)])

        n_reg = reg_pred.size
        reg_rows = SUBLANES * max(
            1, (((n_reg + LANES - 1) // LANES) + SUBLANES - 1) // SUBLANES)
        pad = reg_rows * LANES - n_reg
        reg_pred = jnp.pad(reg_pred.astype(jnp.float32), (0, pad)).reshape(reg_rows, LANES)
        reg_tgt = jnp.pad(reg_tgt.astype(jnp.float32), (0, pad)).reshape(reg_rows, LANES)
        reg_w = jnp.pad(reg_w.astype(jnp.float32), (0, pad)).reshape(reg_rows, LANES)

        loss_sum, npos, reg_sum = _fused_loss_call(
            p2d, g2d, reg_pred, reg_tgt, reg_w)

        cls_loss = jnp.where(npos > 0, -loss_sum / jnp.maximum(npos, 1.0), -loss_sum)
        regr_loss = reg_sum / (num + 1e-6)
        return cls_loss * self.alpha, regr_loss


# ----------------------------------------------------------------------------
# Pure-JAX reference (for a silent correctness check).
# ----------------------------------------------------------------------------
def _ref_loss(pre, gt, down_stride, alpha, beta, gamma):
    pre_heatmap, pre_wh, pre_offset = pre
    imgs, gt_boxes, gt_classes, gt_hm, infos = gt
    p = jnp.maximum(pre_heatmap, 1e-12)
    pos = (gt_hm == 1.0).astype(jnp.float32)
    neg = (gt_hm < 1.0).astype(jnp.float32)
    nw = (1.0 - gt_hm) ** 4
    pos_l = jnp.sum(jnp.log(p) * (1 - p) ** 2 * pos)
    neg_l = jnp.sum(jnp.log(1 - p) * p * p * nw * neg)
    npos = jnp.sum(pos)
    cls = jnp.where(npos == 0, -neg_l, -(pos_l + neg_l) / npos)
    wh_loss, off_loss, num = 0.0, 0.0, 0
    for b in range(imgs.shape[0]):
        ct = infos[b]['center']
        ct_int = ct.astype(jnp.int32)
        n_b = ct.shape[0]
        num += n_b
        xs, ys = ct_int[:, 0], ct_int[:, 1]
        pw = pre_wh[b][:, ys, xs].reshape(-1)
        po = pre_offset[b][:, ys, xs].reshape(-1)
        boxes = gt_boxes[b][:n_b]
        wh = jnp.stack([boxes[:, 2] - boxes[:, 0],
                        boxes[:, 3] - boxes[:, 1]]).reshape(-1) / down_stride
        off = (ct - ct_int.astype(jnp.float32)).T.reshape(-1)
        wh_loss += jnp.sum(jnp.abs(pw - wh))
        off_loss += jnp.sum(jnp.abs(po - off))
    regr = (wh_loss * beta + off_loss * gamma) / (num + 1e-6)
    return cls * alpha, regr


if __name__ == "__main__":
    B, C, H, W = 2, 4, 16, 16
    down_stride = 4
    alpha, beta, gamma = 1.0, 0.1, 1.0

    key = jax.random.PRNGKey(0)
    k1, k2, k3, k4 = jax.random.split(key, 4)

    # predictions
    pre_heatmap = jax.nn.sigmoid(jax.random.normal(k1, (B, C, H, W), jnp.float32))
    pre_wh = jax.random.normal(k2, (B, 2, H, W), jnp.float32) * 4.0
    pre_offset = jax.nn.sigmoid(jax.random.normal(k3, (B, 2, H, W), jnp.float32))

    # ground-truth heatmap in [0, 0.95) with a few exact 1.0 peaks
    gt_hm = jax.random.uniform(k4, (B, C, H, W), jnp.float32, 0.0, 0.95)
    gt_hm = gt_hm.at[0, 1, 4, 5].set(1.0).at[0, 2, 8, 9].set(1.0)
    gt_hm = gt_hm.at[1, 0, 3, 12].set(1.0)

    imgs = jnp.zeros((B, 3, H * down_stride, W * down_stride), jnp.float32)

    # boxes / classes / centers (deterministic via numpy RandomState)
    Nmax = 3
    n_per_batch = [3, 2]
    rng = np.random.RandomState(0)
    gt_boxes_np = np.zeros((B, Nmax, 4), np.float32)
    gt_classes_np = np.zeros((B, Nmax), np.int32)
    infos = []
    for b in range(B):
        nb = n_per_batch[b]
        centers = np.stack([rng.uniform(1, W - 2, nb),
                            rng.uniform(1, H - 2, nb)], axis=1).astype(np.float32)
        x1 = rng.uniform(0, 10, nb).astype(np.float32)
        y1 = rng.uniform(0, 10, nb).astype(np.float32)
        w = rng.uniform(4, 30, nb).astype(np.float32)
        h = rng.uniform(4, 30, nb).astype(np.float32)
        gt_boxes_np[b, :nb] = np.stack([x1, y1, x1 + w, y1 + h], axis=1)
        gt_classes_np[b, :nb] = rng.randint(1, 5, nb)
        infos.append({'center': jnp.asarray(centers)})
    gt_boxes = jnp.asarray(gt_boxes_np)
    gt_classes = jnp.asarray(gt_classes_np)

    pre = (pre_heatmap, pre_wh, pre_offset)
    gt = (imgs, gt_boxes, gt_classes, gt_hm, infos)

    loss_fn = Loss(down_stride=down_stride, alpha=alpha, beta=beta, gamma=gamma)
    cls_loss, regr_loss = loss_fn(pre, gt)
    jax.block_until_ready((cls_loss, regr_loss))

    # silent correctness check vs pure-JAX reference
    cls_ref, regr_ref = _ref_loss(pre, gt, down_stride, alpha, beta, gamma)
    np.testing.assert_allclose(np.asarray(cls_loss), np.asarray(cls_ref),
                               rtol=1e-4, atol=1e-5)
    np.testing.assert_allclose(np.asarray(regr_loss), np.asarray(regr_ref),
                               rtol=1e-4, atol=1e-5)

    print("KERNEL_OK")
</pallas_src>

<mosaic_0001>
module attributes {stable_mosaic.version = 11 : i64} {
  func.func @_fused_loss_kernel(%arg0: i32, %arg1: i32, %arg2: memref<16x128xf32, #tpu.memory_space<vmem>>, %arg3: memref<16x128xf32, #tpu.memory_space<vmem>>, %arg4: memref<8x128xf32, #tpu.memory_space<vmem>>, %arg5: memref<8x128xf32, #tpu.memory_space<vmem>>, %arg6: memref<8x128xf32, #tpu.memory_space<vmem>>, %arg7: memref<8x128xf32, #tpu.memory_space<vmem>>, %arg8: memref<8x128xf32, #tpu.memory_space<vmem>>, %arg9: memref<8x128xf32, #tpu.memory_space<vmem>>, %arg10: memref<8x128xf32, #tpu.memory_space<vmem>>, %arg11: memref<8x128xf32, #tpu.memory_space<vmem>>) attributes {dimension_semantics = [#tpu.dimension_semantics<arbitrary>, #tpu.dimension_semantics<arbitrary>], iteration_bounds = array<i64: 1, 1>, scalar_prefetch = 0 : i64, scratch_operands = 2 : i64, tpu.core_type = #tpu.core_type<tc>, window_params = [{transform_indices = @transform_0, window_bounds = array<i64: 16, 128>}, {transform_indices = @transform_1, window_bounds = array<i64: 16, 128>}, {pipeline_mode = #tpu.pipeline_mode<synchronous>, transform_indices = @transform_2, window_bounds = array<i64: 8, 128>}, {pipeline_mode = #tpu.pipeline_mode<synchronous>, transform_indices = @transform_3, window_bounds = array<i64: 8, 128>}, {pipeline_mode = #tpu.pipeline_mode<synchronous>, transform_indices = @transform_4, window_bounds = array<i64: 8, 128>}, {transform_indices = @transform_5, window_bounds = array<i64: 8, 128>}, {transform_indices = @transform_6, window_bounds = array<i64: 8, 128>}, {transform_indices = @transform_7, window_bounds = array<i64: 8, 128>}]} {
    %c0_i32 = arith.constant 0 : i32
    %0 = arith.cmpi eq, %arg1, %c0_i32 : i32
    %1 = arith.extui %0 : i1 to i32
    %c0_i32_0 = arith.constant 0 : i32
    %2 = arith.cmpi ne, %1, %c0_i32_0 : i32
    scf.if %2 {
      %cst = arith.constant 0.000000e+00 : f32
      %23 = vector.broadcast %cst : f32 to vector<8x128xf32>
      %c0 = arith.constant 0 : index
      %c0_11 = arith.constant 0 : index
      %24 = vector.load %arg10[%c0, %c0_11] : memref<8x128xf32, #tpu.memory_space<vmem>>, vector<8x128xf32>
      tpu.vector_store %arg10[%c0, %c0_11], %23 {strides = array<i32>} : memref<8x128xf32, #tpu.memory_space<vmem>>, vector<8x128xf32>,
      %cst_12 = arith.constant 0.000000e+00 : f32
      %25 = vector.broadcast %cst_12 : f32 to vector<8x128xf32>
      %c0_13 = arith.constant 0 : index
      %c0_14 = arith.constant 0 : index
      %26 = vector.load %arg11[%c0_13, %c0_14] : memref<8x128xf32, #tpu.memory_space<vmem>>, vector<8x128xf32>
      tpu.vector_store %arg11[%c0_13, %c0_14], %25 {strides = array<i32>} : memref<8x128xf32, #tpu.memory_space<vmem>>, vector<8x128xf32>,
    } else {
    }
    %c1_i32 = arith.constant 1 : i32
    %3 = arith.muli %arg0, %c1_i32 : i32
    %4 = arith.addi %3, %arg1 : i32
    %c16_i32 = arith.constant 16 : i32
    %5 = arith.muli %4, %c16_i32 : i32
    %c16_i32_1 = arith.constant 16 : i32
    %6 = arith.addi %5, %c16_i32_1 : i32
    %c16_i32_2 = arith.constant 16 : i32
    %7 = arith.cmpi sle, %6, %c16_i32_2 : i32
    %c16_i32_3 = arith.constant 16 : i32
    %8 = arith.cmpi slt, %5, %c16_i32_3 : i32
    %true = arith.constant true
    %9 = arith.xori %7, %true : i1
    %10 = arith.andi %8, %9 : i1
    %11 = arith.extui %7 : i1 to i32
    %c0_i32_4 = arith.constant 0 : i32
    %12 = arith.cmpi ne, %11, %c0_i32_4 : i32
    scf.if %12 {
      %c0 = arith.constant 0 : index
      %c0_11 = arith.constant 0 : index
      %23 = vector.load %arg2[%c0, %c0_11] : memref<16x128xf32, #tpu.memory_space<vmem>>, vector<16x128xf32>
      %c0_12 = arith.constant 0 : index
      %c0_13 = arith.constant 0 : index
      %24 = vector.load %arg3[%c0_12, %c0_13] : memref<16x128xf32, #tpu.memory_space<vmem>>, vector<16x128xf32>
      %cst = arith.constant 9.99999996E-13 : f32
      %25 = vector.broadcast %cst : f32 to vector<16x128xf32>
      %26 = arith.maximumf %23, %25 : vector<16x128xf32>
      %cst_14 = arith.constant 1.000000e+00 : f32
      %27 = vector.broadcast %cst_14 : f32 to vector<16x128xf32>
      %28 = arith.cmpf oeq, %24, %27 : vector<16x128xf32>
      %29 = arith.extui %28 : vector<16x128xi1> to vector<16x128xi32>
      %30 = arith.sitofp %29 : vector<16x128xi32> to vector<16x128xf32>
      %cst_15 = arith.constant 1.000000e+00 : f32
      %31 = vector.broadcast %cst_15 : f32 to vector<16x128xf32>
      %32 = arith.cmpf olt, %24, %31 : vector<16x128xf32>
      %33 = arith.extui %32 : vector<16x128xi1> to vector<16x128xi32>
      %34 = arith.sitofp %33 : vector<16x128xi32> to vector<16x128xf32>
      %cst_16 = arith.constant 1.000000e+00 : f32
      %35 = vector.broadcast %cst_16 : f32 to vector<16x128xf32>
      %36 = arith.subf %35, %24 : vector<16x128xf32>
      %37 = arith.mulf %36, %36 : vector<16x128xf32>
      %38 = arith.mulf %37, %37 : vector<16x128xf32>
      %cst_17 = arith.constant 1.000000e+00 : f32
      %39 = vector.broadcast %cst_17 : f32 to vector<16x128xf32>
      %40 = arith.subf %39, %26 : vector<16x128xf32>
      %41 = arith.select %28, %26, %40 : vector<16x128xi1>, vector<16x128xf32>
      %42 = math.log %41 : vector<16x128xf32>
      %43 = arith.mulf %40, %40 : vector<16x128xf32>
      %44 = arith.mulf %43, %30 : vector<16x128xf32>
      %45 = arith.mulf %26, %26 : vector<16x128xf32>
      %46 = arith.mulf %45, %38 : vector<16x128xf32>
      %47 = arith.mulf %46, %34 : vector<16x128xf32>
      %48 = arith.addf %44, %47 : vector<16x128xf32>
      %49 = arith.mulf %42, %48 : vector<16x128xf32>
      %c0_18 = arith.constant 0 : index
      %c0_19 = arith.constant 0 : index
      %50 = vector.load %arg10[%c0_18, %c0_19] : memref<8x128xf32, #tpu.memory_space<vmem>>, vector<8x128xf32>
      %51 = vector.shape_cast %49 : vector<16x128xf32> to vector<2x8x128xf32>
      %cst_20 = arith.constant dense<0.000000e+00> : vector<8x128xf32>
      %52 = vector.multi_reduction <add>, %51, %cst_20 [0] : vector<2x8x128xf32> to vector<8x128xf32>
      %53 = arith.addf %50, %52 : vector<8x128xf32>
      %c0_21 = arith.constant 0 : index
      %c0_22 = arith.constant 0 : index
      %54 = vector.load %arg10[%c0_21, %c0_22] : memref<8x128xf32, #tpu.memory_space<vmem>>, vector<8x128xf32>
      tpu.vector_store %arg10[%c0_21, %c0_22], %53 {strides = array<i32>} : memref<8x128xf32, #tpu.memory_space<vmem>>, vector<8x128xf32>,
      %c0_23 = arith.constant 0 : index
      %c0_24 = arith.constant 0 : index
      %55 = vector.load %arg11[%c0_23, %c0_24] : memref<8x128xf32, #tpu.memory_space<vmem>>, vector<8x128xf32>
      %56 = vector.shape_cast %30 : vector<16x128xf32> to vector<2x8x128xf32>
      %cst_25 = arith.constant dense<0.000000e+00> : vector<8x128xf32>
      %57 = vector.multi_reduction <add>, %56, %cst_25 [0] : vector<2x8x128xf32> to vector<8x128xf32>
      %58 = arith.addf %55, %57 : vector<8x128xf32>
      %c0_26 = arith.constant 0 : index
      %c0_27 = arith.constant 0 : index
      %59 = vector.load %arg11[%c0_26, %c0_27] : memref<8x128xf32, #tpu.memory_space<vmem>>, vector<8x128xf32>
      tpu.vector_store %arg11[%c0_26, %c0_27], %58 {strides = array<i32>} : memref<8x128xf32, #tpu.memory_space<vmem>>, vector<8x128xf32>,
    } else {
    }
    %13 = arith.extui %10 : i1 to i32
    %c0_i32_5 = arith.constant 0 : i32
    %14 = arith.cmpi ne, %13, %c0_i32_5 : i32
    scf.if %14 {
      %23 = tpu.iota {dimensions = array<i32: 0>} : vector<16x128xi32>
      %24 = vector.broadcast %5 : i32 to vector<16x128xi32>
      %25 = arith.addi %24, %23 : vector<16x128xi32>
      %c16_i32_11 = arith.constant 16 : i32
      %26 = vector.broadcast %c16_i32_11 : i32 to vector<16x128xi32>
      %27 = arith.cmpi slt, %25, %26 : vector<16x128xi32>
      %c0 = arith.constant 0 : index
      %c0_12 = arith.constant 0 : index
      %28 = vector.load %arg3[%c0, %c0_12] : memref<16x128xf32, #tpu.memory_space<vmem>>, vector<16x128xf32>
      %cst = arith.constant 2.000000e+00 : f32
      %29 = vector.broadcast %cst : f32 to vector<16x128xf32>
      %30 = arith.select %27, %28, %29 : vector<16x128xi1>, vector<16x128xf32>
      %c0_13 = arith.constant 0 : index
      %c0_14 = arith.constant 0 : index
      %31 = vector.load %arg2[%c0_13, %c0_14] : memref<16x128xf32, #tpu.memory_space<vmem>>, vector<16x128xf32>
      %cst_15 = arith.constant 5.000000e-01 : f32
      %32 = vector.broadcast %cst_15 : f32 to vector<16x128xf32>
      %33 = arith.select %27, %31, %32 : vector<16x128xi1>, vector<16x128xf32>
      %cst_16 = arith.constant 9.99999996E-13 : f32
      %34 = vector.broadcast %cst_16 : f32 to vector<16x128xf32>
      %35 = arith.maximumf %33, %34 : vector<16x128xf32>
      %cst_17 = arith.constant 1.000000e+00 : f32
      %36 = vector.broadcast %cst_17 : f32 to vector<16x128xf32>
      %37 = arith.cmpf oeq, %30, %36 : vector<16x128xf32>
      %38 = arith.extui %37 : vector<16x128xi1> to vector<16x128xi32>
      %39 = arith.sitofp %38 : vector<16x128xi32> to vector<16x128xf32>
      %cst_18 = arith.constant 1.000000e+00 : f32
      %40 = vector.broadcast %cst_18 : f32 to vector<16x128xf32>
      %41 = arith.cmpf olt, %30, %40 : vector<16x128xf32>
      %42 = arith.extui %41 : vector<16x128xi1> to vector<16x128xi32>
      %43 = arith.sitofp %42 : vector<16x128xi32> to vector<16x128xf32>
      %cst_19 = arith.constant 1.000000e+00 : f32
      %44 = vector.broadcast %cst_19 : f32 to vector<16x128xf32>
      %45 = arith.subf %44, %30 : vector<16x128xf32>
      %46 = arith.mulf %45, %45 : vector<16x128xf32>
      %47 = arith.mulf %46, %46 : vector<16x128xf32>
      %cst_20 = arith.constant 1.000000e+00 : f32
      %48 = vector.broadcast %cst_20 : f32 to vector<16x128xf32>
      %49 = arith.subf %48, %35 : vector<16x128xf32>
      %50 = arith.select %37, %35, %49 : vector<16x128xi1>, vector<16x128xf32>
      %51 = math.log %50 : vector<16x128xf32>
      %52 = arith.mulf %49, %49 : vector<16x128xf32>
      %53 = arith.mulf %52, %39 : vector<16x128xf32>
      %54 = arith.mulf %35, %35 : vector<16x128xf32>
      %55 = arith.mulf %54, %47 : vector<16x128xf32>
      %56 = arith.mulf %55, %43 : vector<16x128xf32>
      %57 = arith.addf %53, %56 : vector<16x128xf32>
      %58 = arith.mulf %51, %57 : vector<16x128xf32>
      %c0_21 = arith.constant 0 : index
      %c0_22 = arith.constant 0 : index
      %59 = vector.load %arg10[%c0_21, %c0_22] : memref<8x128xf32, #tpu.memory_space<vmem>>, vector<8x128xf32>
      %60 = vector.shape_cast %58 : vector<16x128xf32> to vector<2x8x128xf32>
      %cst_23 = arith.constant dense<0.000000e+00> : vector<8x128xf32>
      %61 = vector.multi_reduction <add>, %60, %cst_23 [0] : vector<2x8x128xf32> to vector<8x128xf32>
      %62 = arith.addf %59, %61 : vector<8x128xf32>
      %c0_24 = arith.constant 0 : index
      %c0_25 = arith.constant 0 : index
      %63 = vector.load %arg10[%c0_24, %c0_25] : memref<8x128xf32, #tpu.memory_space<vmem>>, vector<8x128xf32>
      tpu.vector_store %arg10[%c0_24, %c0_25], %62 {strides = array<i32>} : memref<8x128xf32, #tpu.memory_space<vmem>>, vector<8x128xf32>,
      %c0_26 = arith.constant 0 : index
      %c0_27 = arith.constant 0 : index
      %64 = vector.load %arg11[%c0_26, %c0_27] : memref<8x128xf32, #tpu.memory_space<vmem>>, vector<8x128xf32>
      %65 = vector.shape_cast %39 : vector<16x128xf32> to vector<2x8x128xf32>
      %cst_28 = arith.constant dense<0.000000e+00> : vector<8x128xf32>
      %66 = vector.multi_reduction <add>, %65, %cst_28 [0] : vector<2x8x128xf32> to vector<8x128xf32>
      %67 = arith.addf %64, %66 : vector<8x128xf32>
      %c0_29 = arith.constant 0 : index
      %c0_30 = arith.constant 0 : index
      %68 = vector.load %arg11[%c0_29, %c0_30] : memref<8x128xf32, #tpu.memory_space<vmem>>, vector<8x128xf32>
      tpu.vector_store %arg11[%c0_29, %c0_30], %67 {strides = array<i32>} : memref<8x128xf32, #tpu.memory_space<vmem>>, vector<8x128xf32>,
    } else {
    }
    %c0_i32_6 = arith.constant 0 : i32
    %15 = arith.cmpi eq, %arg1, %c0_i32_6 : i32
    %16 = arith.extui %15 : i1 to i32
    %c0_i32_7 = arith.constant 0 : i32
    %17 = arith.cmpi ne, %16, %c0_i32_7 : i32
    scf.if %17 {
      %c0 = arith.constant 0 : index
      %c0_11 = arith.constant 0 : index
      %23 = vector.load %arg10[%c0, %c0_11] : memref<8x128xf32, #tpu.memory_space<vmem>>, vector<8x128xf32>
      %c0_12 = arith.constant 0 : index
      %c0_13 = arith.constant 0 : index
      %24 = vector.load %arg7[%c0_12, %c0_13] : memref<8x128xf32, #tpu.memory_space<vmem>>, vector<8x128xf32>
      tpu.vector_store %arg7[%c0_12, %c0_13], %23 {strides = array<i32>} : memref<8x128xf32, #tpu.memory_space<vmem>>, vector<8x128xf32>,
      %c0_14 = arith.constant 0 : index
      %c0_15 = arith.constant 0 : index
      %25 = vector.load %arg11[%c0_14, %c0_15] : memref<8x128xf32, #tpu.memory_space<vmem>>, vector<8x128xf32>
      %c0_16 = arith.constant 0 : index
      %c0_17 = arith.constant 0 : index
      %26 = vector.load %arg8[%c0_16, %c0_17] : memref<8x128xf32, #tpu.memory_space<vmem>>, vector<8x128xf32>
      tpu.vector_store %arg8[%c0_16, %c0_17], %25 {strides = array<i32>} : memref<8x128xf32, #tpu.memory_space<vmem>>, vector<8x128xf32>,
    } else {
    }
    %c0_i32_8 = arith.constant 0 : i32
    %18 = arith.cmpi eq, %arg1, %c0_i32_8 : i32
    %c0_i32_9 = arith.constant 0 : i32
    %19 = arith.cmpi eq, %arg0, %c0_i32_9 : i32
    %20 = arith.andi %18, %19 : i1
    %21 = arith.extui %20 : i1 to i32
    %c0_i32_10 = arith.constant 0 : i32
    %22 = arith.cmpi ne, %21, %c0_i32_10 : i32
    scf.if %22 {
      %c0 = arith.constant 0 : index
      %c0_11 = arith.constant 0 : index
      %23 = vector.load %arg4[%c0, %c0_11] : memref<8x128xf32, #tpu.memory_space<vmem>>, vector<8x128xf32>
      %c0_12 = arith.constant 0 : index
      %c0_13 = arith.constant 0 : index
      %24 = vector.load %arg5[%c0_12, %c0_13] : memref<8x128xf32, #tpu.memory_space<vmem>>, vector<8x128xf32>
      %25 = arith.subf %23, %24 : vector<8x128xf32>
      %26 = math.absf %25 : vector<8x128xf32>
      %c0_14 = arith.constant 0 : index
      %c0_15 = arith.constant 0 : index
      %27 = vector.load %arg6[%c0_14, %c0_15] : memref<8x128xf32, #tpu.memory_space<vmem>>, vector<8x128xf32>
      %28 = arith.mulf %26, %27 : vector<8x128xf32>
      %29 = vector.shape_cast %28 : vector<8x128xf32> to vector<1x8x128xf32>
      %cst = arith.constant dense<0.000000e+00> : vector<8x128xf32>
      %30 = vector.multi_reduction <add>, %29, %cst [0] : vector<1x8x128xf32> to vector<8x128xf32>
      %c0_16 = arith.constant 0 : index
      %c0_17 = arith.constant 0 : index
      %31 = vector.load %arg9[%c0_16, %c0_17] : memref<8x128xf32, #tpu.memory_space<vmem>>, vector<8x128xf32>
      tpu.vector_store %arg9[%c0_16, %c0_17], %30 {strides = array<i32>} : memref<8x128xf32, #tpu.memory_space<vmem>>, vector<8x128xf32>,
    } else {
    }
    return
  }
  func.func @transform_0(%arg0: i32, %arg1: i32) -> (i32, i32) {
    %c1_i32 = arith.constant 1 : i32
    %0 = arith.muli %arg0, %c1_i32 : i32
    %1 = arith.addi %0, %arg1 : i32
    %c0_i32 = arith.constant 0 : i32
    %2 = arith.minsi %1, %c0_i32 : i32
    %c0_i32_0 = arith.constant 0 : i32
    %c0_i32_1 = arith.constant 0 : i32
    return %2, %c0_i32_0 : i32, i32
  }
  func.func @transform_1(%arg0: i32, %arg1: i32) -> (i32, i32) {
    %c1_i32 = arith.constant 1 : i32
    %0 = arith.muli %arg0, %c1_i32 : i32
    %1 = arith.addi %0, %arg1 : i32
    %c0_i32 = arith.constant 0 : i32
    %2 = arith.minsi %1, %c0_i32 : i32
    %c0_i32_0 = arith.constant 0 : i32
    %c0_i32_1 = arith.constant 0 : i32
    return %2, %c0_i32_0 : i32, i32
  }
  func.func @transform_2(%arg0: i32, %arg1: i32) -> (i32, i32) {
    %c0_i32 = arith.constant 0 : i32
    %c0_i32_0 = arith.constant 0 : i32
    %c0_i32_1 = arith.constant 0 : i32
    return %c0_i32, %c0_i32_0 : i32, i32
  }
  func.func @transform_3(%arg0: i32, %arg1: i32) -> (i32, i32) {
    %c0_i32 = arith.constant 0 : i32
    %c0_i32_0 = arith.constant 0 : i32
    %c0_i32_1 = arith.constant 0 : i32
    return %c0_i32, %c0_i32_0 : i32, i32
  }
  func.func @transform_4(%arg0: i32, %arg1: i32) -> (i32, i32) {
    %c0_i32 = arith.constant 0 : i32
    %c0_i32_0 = arith.constant 0 : i32
    %c0_i32_1 = arith.constant 0 : i32
    return %c0_i32, %c0_i32_0 : i32, i32
  }
  func.func @transform_5(%arg0: i32, %arg1: i32) -> (i32, i32) {
    %c0_i32 = arith.constant 0 : i32
    %c0_i32_0 = arith.constant 0 : i32
    return %arg0, %c0_i32 : i32, i32
  }
  func.func @transform_6(%arg0: i32, %arg1: i32) -> (i32, i32) {
    %c0_i32 = arith.constant 0 : i32
    %c0_i32_0 = arith.constant 0 : i32
    return %arg0, %c0_i32 : i32, i32
  }
  func.func @transform_7(%arg0: i32, %arg1: i32) -> (i32, i32) {
    %c0_i32 = arith.constant 0 : i32
    %c0_i32_0 = arith.constant 0 : i32
    return %arg0, %c0_i32 : i32, i32
  }
}

</mosaic_0001>

<bundles_post_ra>
// kernel: tpu_custom_call.1
= control target key start
LH: loop header
LB: loop body
LE: loop exit
PB: predicated region body
PF: predicated region fallthrough
CT: control target
= control target key end

     0   :  { %13 = vsyncpa [#allocation5], 0  ;;  %s637_s0 = inlined_call_operand.hbm [shape: f32[16,128], index: 0, kind: input, shape index: {}]   ;;  %s638_s1 = inlined_call_operand.hbm [shape: f32[16,128], index: 1, kind: input, shape index: {}]   ;;  %s639_s2 = inlined_call_operand.hbm [shape: f32[8,128], index: 2, kind: input, shape index: {}]   ;;  %s640_s3 = inlined_call_operand.vmem [shape: f32[8,128], index: 3, kind: input, shape index: {}]   ;;  %s641_s4 = inlined_call_operand.hbm [shape: f32[8,128], index: 4, kind: input, shape index: {}]   ;;  %s642_s5 = inlined_call_operand.hbm [shape: f32[8,128], index: 5, kind: output, shape index: {0}]   ;;  %s643_s6 = inlined_call_operand.hbm [shape: f32[8,128], index: 6, kind: output, shape index: {1}]   ;;  %s644_s7 = inlined_call_operand.hbm [shape: f32[8,128], index: 7, kind: output, shape index: {2}]  }
   0x1   :  { %14 = vsyncpa [#allocation8], 0 }
   0x2   :  { %15 = vsyncpa [#allocation11], 0 }
   0x3   :  { %16 = vsyncpa [#allocation6], 0 }
   0x4   :  { %17 = vsyncpa [#allocation14], 0  ;;  %s489_s24 = smov [#allocation7]   ;;  %s490_s26 = smov [#allocation4]  }
   0x5   :  { %s47_s25 = sshll.u32 %s489_s24, 4  ;;  %s29_s27 = sshll.u32 %s490_s26, 4  ;;  %s48_s25 = int_to_ptr.vmem [resolvable:$true] %s47_s25  ;;  %s539_s27 = int_to_ptr.vmem [resolvable:$true] %s29_s27 }
   0x6   :  { %s325_s30 = scalar_lea.hbm %s638_s1, 256 }
   0x7   :  { %p326_p0 = scmp.ne.s32.totalorder %s638_s1, %s325_s30  ;;  %p329_p1 = scmp.lt.u32.totalorder %s325_s30, %s638_s1 }
   0x9   :  { %p331_p2 = pnand %p329_p1, %p326_p0 }
   0xb   :  { %334 = shalt.err (!%p331_p2)
}
   0xc   :  { %s335_s12 = scalar_lea.vmem %s48_s25, 256  ;;  %p340_p4 = scmp.lt.s32.totalorder %s48_s25, %s48_s25 }
   0xd   :  { %p336_p3 = scmp.ne.s32.totalorder %s48_s25, %s335_s12  ;;  %p341_p5 = scmp.lt.s32.totalorder %s335_s12, %s335_s12 }
   0xf   :  { %p342_p6 = por %p341_p5, %p340_p4 }
  0x11   :  { %p343_p7 = pnand %p342_p6, %p336_p3 }
  0x13   :  { %346 = shalt.err (!%p343_p7)
}
  0x14   :  { %s491_s13 = smov 128   ;;  %s492_s14 = smov 8  }
  0x15   :  { %53 = dma.hbm_to_vmem [thread:$0]  %s638_s1, 256, %s48_s25, [#allocation8], %s491_s13, %s491_s13, %s492_s14  }
  0x16   :  { %s347_s19 = scalar_lea.hbm %s637_s0, 256 }
  0x17   :  { %p348_p8 = scmp.ne.s32.totalorder %s637_s0, %s347_s19  ;;  %p351_p9 = scmp.lt.u32.totalorder %s347_s19, %s637_s0 }
  0x19   :  { %p353_p10 = pnand %p351_p9, %p348_p8 }
  0x1b   :  { %356 = shalt.err (!%p353_p10)
}
  0x1c   :  { %s357_s24 = scalar_lea.vmem %s539_s27, 256  ;;  %p362_p12 = scmp.lt.s32.totalorder %s539_s27, %s539_s27 }
  0x1d   :  { %p358_p11 = scmp.ne.s32.totalorder %s539_s27, %s357_s24  ;;  %p363_p13 = scmp.lt.s32.totalorder %s357_s24, %s357_s24 }
  0x1f   :  { %p364_p0 = por %p363_p13, %p362_p12 }
  0x21   :  { %p365_p1 = pnand %p364_p0, %p358_p11 }
  0x23   :  { %368 = shalt.err (!%p365_p1)
}
  0x24   :  { %35 = dma.hbm_to_vmem [thread:$0]  %s637_s0, 256, %s539_s27, [#allocation5], %s491_s13, %s491_s13, %s492_s14  }
  0x25   :  { %s493_s26 = smov [#allocation9]   ;;  %s494_s29 = smov [#allocation10]  }
  0x26   :  { %s60_s28 = sshll.u32 %s493_s26, 4  ;;  %s72_s30 = sshll.u32 %s494_s29, 4  ;;  %s61_s28 = int_to_ptr.vmem [resolvable:$true] %s60_s28  ;;  %s73_s30 = int_to_ptr.vmem [resolvable:$true] %s72_s30 }
  0x27   :  { %s369_s10 = scalar_lea.hbm %s639_s2, 128 }
  0x28   :  { %p370_p2 = scmp.ne.s32.totalorder %s639_s2, %s369_s10  ;;  %p373_p3 = scmp.lt.u32.totalorder %s369_s10, %s639_s2 }
  0x2a   :  { %p375_p4 = pnand %p373_p3, %p370_p2 }
  0x2c   :  { %378 = shalt.err (!%p375_p4)
}
  0x2d   :  { %s379_s0 = scalar_lea.vmem %s61_s28, 128  ;;  %p384_p6 = scmp.lt.s32.totalorder %s61_s28, %s61_s28 }
  0x2e   :  { %p380_p5 = scmp.ne.s32.totalorder %s61_s28, %s379_s0  ;;  %p385_p7 = scmp.lt.s32.totalorder %s379_s0, %s379_s0 }
  0x30   :  { %p386_p8 = por %p385_p7, %p384_p6 }
  0x32   :  { %p387_p9 = pnand %p386_p8, %p380_p5 }
  0x34   :  { %390 = shalt.err (!%p387_p9)
}
  0x35   :  { %63 = dma.hbm_to_vmem [thread:$0]  %s639_s2, 128, %s61_s28, [#allocation8]  }
  0x36   :  { %s391_s18 = scalar_lea.hbm %s641_s4, 128 }
  0x37   :  { %p392_p10 = scmp.ne.s32.totalorder %s641_s4, %s391_s18  ;;  %p395_p11 = scmp.lt.u32.totalorder %s391_s18, %s641_s4 }
  0x39   :  { %p397_p12 = pnand %p395_p11, %p392_p10 }
  0x3b   :  { %400 = shalt.err (!%p397_p12)
}
  0x3c   :  { %s401_s23 = scalar_lea.vmem %s73_s30, 128  ;;  %p406_p0 = scmp.lt.s32.totalorder %s73_s30, %s73_s30 }
  0x3d   :  { %p402_p13 = scmp.ne.s32.totalorder %s73_s30, %s401_s23  ;;  %p407_p1 = scmp.lt.s32.totalorder %s401_s23, %s401_s23 }
  0x3f   :  { %p408_p2 = por %p407_p1, %p406_p0 }
  0x41   :  { %p409_p3 = pnand %p408_p2, %p402_p13 }
  0x43   :  { %412 = shalt.err (!%p409_p3)
}
  0x44   :  { %75 = dma.hbm_to_vmem [thread:$0]  %s641_s4, 128, %s73_s30, [#allocation11]  }
  0x45   :  { %479 = dma.done.wait [#allocation5], 256  }
  0x46   :  { %480 = vsyncadd [#allocation5], 4294967040 }
  0x47   :  { %481 = dma.done.wait [#allocation8], 384  }
  0x48   :  { %482 = vsyncadd [#allocation8], 4294966912 }
  0x49   :  { %483 = dma.done.wait [#allocation11], 128  }
  0x4a   :  { %484 = vsyncadd [#allocation11], 4294967168  ;;  %v113_v0 = vld [vmem:[#allocation4] sm:$0xff]  ;;  %v114_v1 = vld [vmem:[#allocation4 + $0x8] sm:$0xff]  ;;  %s495_s1 = smov [#allocation13]   ;;  %v496_v6 = vmov 0.0  }
  0x4b   :  { %v115_v2 = vld [vmem:[#allocation7] sm:$0xff]  ;;  %s271_s25 = sshll.u32 %s495_s1, 4  ;;  %v116_v3 = vld [vmem:[#allocation7 + $0x8] sm:$0xff]  ;;  %v117_v4 = vmax.f32 %v113_v0, 1e-12  ;;  %v247_v17 = vld [vmem:[#allocation9] sm:$0xff]  ;;  %s272_s25 = int_to_ptr.vmem [resolvable:$true] %s271_s25 }
  0x4c   :  { %v118_v5 = vmax.f32 %v114_v1, 1e-12  ;;  %vm119_vm0 = vcmp.eq.f32.partialorder %v115_v2, 1.0  ;;  %vm120_vm1 = vcmp.eq.f32.partialorder %v116_v3, 1.0  ;;  %v131_v9 = vsub.f32 1.0, %v115_v2  ;;  %v248_v18 = vld [vmem:[%s640_s3] sm:$0xff]  ;;  %p418_p5 = scmp.lt.s32.totalorder %s272_s25, %s272_s25 }
  0x4d   :  { %v303_v7 = vsel %vm119_vm0, 1.0, %v496_v6  ;;  %v304_v8 = vsel %vm120_vm1, 1.0, %v496_v6  ;;  %v132_v10 = vsub.f32 1.0, %v116_v3  ;;  %v137_v11 = vsub.f32 1.0, %v117_v4  ;;  %s413_s28 = scalar_lea.vmem %s272_s25, 128 }
  0x4e   :  { %v138_v12 = vsub.f32 1.0, %v118_v5  ;;  %v164_v13 = vadd.f32 %v304_v8, %v303_v7  ;;  %vm125_vm2 = vcmp.lt.f32.partialorder %v115_v2, 1.0  ;;  %v133_v14 = vmul.f32 %v131_v9, %v131_v9  ;;  %p414_p4 = scmp.ne.s32.totalorder %s272_s25, %s413_s28  ;;  %p419_p6 = scmp.lt.s32.totalorder %s413_s28, %s413_s28 }
  0x4f   :  { %v134_v15 = vmul.f32 %v132_v10, %v132_v10  ;;  %v139_v16 = vsel %vm119_vm0, %v117_v4, %v137_v11  ;;  %vm126_vm3 = vcmp.lt.f32.partialorder %v116_v3, 1.0  ;;  %v149_v20 = vmul.f32 %v117_v4, %v117_v4 }
  0x50   :  { %v140_v19 = vsel %vm120_vm1, %v118_v5, %v138_v12  ;;  %321 = vlog2.f32 %v139_v16  ;;  %241 = vst [vmem:[#allocation13] sm:$0xff] %v164_v13  ;;  %v135_v21 = vmul.f32 %v133_v14, %v133_v14  ;;  %v145_v23 = vmul.f32 %v137_v11, %v137_v11  ;;  %p420_p7 = por %p419_p6, %p418_p5 }
  0x51   :  { %v136_v22 = vmul.f32 %v134_v15, %v134_v15  ;;  %323 = vlog2.f32 %v140_v19 }
  0x52   :  { %p421_p8 = pnand %p420_p7, %p414_p4 }
  0x54   :  { %424 = shalt.err (!%p421_p8)
}
  0x55   :  { %s425_s3 = scalar_lea.hbm %s643_s6, 128 }
  0x56   :  { %p426_p9 = scmp.ne.s32.totalorder %s643_s6, %s425_s3  ;;  %p429_p10 = scmp.lt.u32.totalorder %s425_s3, %s643_s6 }
  0x58   :  { %p431_p11 = pnand %p429_p10, %p426_p9 }
  0x5a   :  { %434 = shalt.err (!%p431_p11)
}
  0x5b   :  { %274 = dma.vmem_to_hbm [thread:$0]  %s272_s25, 128, %s643_s6, [#allocation14]   ;;  %v146_v24 = vmul.f32 %v138_v12, %v138_v12  ;;  %v305_v25 = vsel %vm125_vm2, 1.0, %v496_v6  ;;  %v150_v26 = vmul.f32 %v118_v5, %v118_v5  ;;  %v249_v27 = vsub.f32 %v247_v17, %v248_v18  ;;  %v251_v30 = vld [vmem:[#allocation10] sm:$0xff] }
  0x5c   :  { %v306_v28 = vsel %vm126_vm3, 1.0, %v496_v6  ;;  %v151_v29 = vmul.f32 %v149_v20, %v135_v21  ;;  %s497_s16 = smov [#allocation15]   ;;  %v147_v33 = vmul.f32 %v303_v7, %v145_v23 }
  0x5d   :  { %s281_s0 = sshll.u32 %s497_s16, 4  ;;  %v152_v31 = vmul.f32 %v150_v26, %v136_v22  ;;  %v250_v32 = vand.u32 2147483647, %v249_v27  ;;  %v148_v35 = vmul.f32 %v304_v8, %v146_v24  ;;  %s282_s0 = int_to_ptr.vmem [resolvable:$true] %s281_s0 }
  0x5e   :  { %v153_v34 = vmul.f32 %v305_v25, %v151_v29  ;;  %s435_s6 = scalar_lea.vmem %s282_s0, 128  ;;  %p440_p13 = scmp.lt.s32.totalorder %s282_s0, %s282_s0 }
  0x5f   :  { %v154_v36 = vmul.f32 %v306_v28, %v152_v31  ;;  %v252_v37 = vmul.f32 %v251_v30, %v250_v32  ;;  %p436_p12 = scmp.ne.s32.totalorder %s282_s0, %s435_s6  ;;  %p441_p0 = scmp.lt.s32.totalorder %s435_s6, %s435_s6 }
  0x60   :  { %v155_v38 = vadd.f32 %v153_v34, %v147_v33 }
  0x61   :  { %254 = vst [vmem:[#allocation15] sm:$0xff] %v252_v37  ;;  %p442_p1 = por %p441_p0, %p440_p13 }
  0x63   :  { %p443_p2 = pnand %p442_p1, %p436_p12 }
  0x65   :  { %446 = shalt.err (!%p443_p2)
}
  0x66   :  { %s447_s14 = scalar_lea.hbm %s644_s7, 128 }
  0x67   :  { %p448_p3 = scmp.ne.s32.totalorder %s644_s7, %s447_s14  ;;  %p451_p4 = scmp.lt.u32.totalorder %s447_s14, %s644_s7 }
  0x69   :  { %p453_p5 = pnand %p451_p4, %p448_p3 }
  0x6b   :  { %456 = shalt.err (!%p453_p5)
}
  0x6c   :  { %284 = dma.vmem_to_hbm [thread:$0]  %s282_s0, 128, %s644_s7, [#allocation14]   ;;  %v322_v39 = vpop.eup %321  ;;  %v156_v40 = vadd.f32 %v154_v36, %v148_v35 }
  0x6d   :  { %v324_v41 = vpop.eup %323  ;;  %v142_v42 = vmul.f32 0.6931472, %v322_v39  ;;  %s498_s23 = smov [#allocation12]  }
  0x6e   :  { %v144_v43 = vmul.f32 0.6931472, %v324_v41  ;;  %s261_s2 = sshll.u32 %s498_s23, 4  ;;  %s262_s2 = int_to_ptr.vmem [resolvable:$true] %s261_s2 }
  0x6f   :  { %v157_v44 = vmul.f32 %v155_v38, %v142_v42  ;;  %s457_s24 = scalar_lea.vmem %s262_s2, 128  ;;  %p462_p7 = scmp.lt.s32.totalorder %s262_s2, %s262_s2 }
  0x70   :  { %v158_v45 = vmul.f32 %v156_v40, %v144_v43  ;;  %p458_p6 = scmp.ne.s32.totalorder %s262_s2, %s457_s24  ;;  %p463_p8 = scmp.lt.s32.totalorder %s457_s24, %s457_s24 }
  0x72   :  { %v160_v46 = vadd.f32 %v158_v45, %v157_v44  ;;  %p464_p9 = por %p463_p8, %p462_p7 }
  0x74   :  { %239 = vst [vmem:[#allocation12] sm:$0xff] %v160_v46  ;;  %p465_p10 = pnand %p464_p9, %p458_p6 }
  0x76   :  { %468 = shalt.err (!%p465_p10)
}
  0x77   :  { %s469_s25 = scalar_lea.hbm %s642_s5, 128 }
  0x78   :  { %p470_p11 = scmp.ne.s32.totalorder %s642_s5, %s469_s25  ;;  %p473_p12 = scmp.lt.u32.totalorder %s469_s25, %s642_s5 }
  0x7a   :  { %p475_p13 = pnand %p473_p12, %p470_p11 }
  0x7c   :  { %478 = shalt.err (!%p475_p13)
}
  0x7d   :  { %264 = dma.vmem_to_hbm [thread:$0]  %s262_s2, 128, %s642_s5, [#allocation6]  }
  0x7e   :  { %485 = dma.done.wait [#allocation6], 128  }
  0x7f   :  { %486 = vsyncadd [#allocation6], 4294967168 }
  0x80   :  { %487 = dma.done.wait [#allocation14], 256  }
  0x81   :  { %488 = vsyncadd [#allocation14], 4294967040 }
  0x82   :  { %294 = vsyncpa [#allocation5], 1 }
  0x83   :  { %295 = vsyncpa [#allocation8], 1 }
  0x84   :  { %296 = vsyncpa [#allocation11], 1 }
  0x85   :  { %297 = vsyncpa [#allocation6], 1 }
  0x86   :  { %298 = vsyncpa [#allocation14], 1 }

</bundles_post_ra>
